<compile_context>
chip_gen: v7x
topology: tpu7x:2x2x1
jax: 0.10.0
libtpu: 0.0.40
codegen_flags: <defaults>
</compile_context>

<pallas_src>
import jax
import jax.numpy as jnp
from jax import lax
from jax.experimental import pallas as pl
from jax.experimental.pallas import tpu as pltpu


def _round_up(n, m):
    return ((n + m - 1) // m) * m


def _pick_tm(B):
    """Batch-tile heuristic. Multiple of 128 when tiled (lane-dense (1, tm) output
    block), single tile for small B. VMEM is never the constraint here."""
    if B <= 128:
        return _round_up(B, 8)
    tm = min(2048, max(128, _round_up(pl.cdiv(B, 8), 128)))
    if B % 128 == 0:
        # Prefer a tile that divides B so the wrapper never pads x.
        while B % tm != 0:
            tm -= 128
    return int(tm)


def mlp_kernel(x_ref, w1_ref, b1_ref, w2_ref, b2_ref, w3_ref, b3_ref, o_ref):
    # Layer 1: (tm, D) @ (D, 64). Matmul operands in the weights' dtype (bf16 on
    # the fast path), f32 accumulation, f32 bias + ReLU (v5e has no bf16 VPU).
    x = x_ref[...].astype(w1_ref.dtype)
    h1 = jnp.dot(x, w1_ref[...], preferred_element_type=jnp.float32) + b1_ref[...]
    h1 = jnp.maximum(h1, 0.0)

    # Layer 2: (tm, 64) @ (64, 64).
    h2 = jnp.dot(h1.astype(w2_ref.dtype), w2_ref[...],
                 preferred_element_type=jnp.float32) + b2_ref[...]
    h2 = jnp.maximum(h2, 0.0)

    # Layer 3, transposed: out^T = W3 @ h2^T -> (1, tm). Contract the 64-axis of
    # W3 (1, 64) with the 64-axis of h2 (tm, 64) so the store is a single
    # lane-dense row instead of a padded (tm, 128) slab. Stays in f32.
    out_row = lax.dot_general(
        w3_ref[...], h2,
        dimension_numbers=(((1,), (1,)), ((), ())),
        preferred_element_type=jnp.float32)
    o_ref[...] = (out_row + b3_ref[0]).astype(o_ref.dtype)


def prepare_params(w1, b1, w2, b2, w3, b3, compute_dtype=jnp.bfloat16):
    """One-time preprocessing of PyTorch-layout (out, in) Linear parameters."""
    w1_t = jnp.asarray(w1, jnp.float32).T.astype(compute_dtype)   # (D, 64)
    w2_t = jnp.asarray(w2, jnp.float32).T.astype(compute_dtype)   # (64, 64)
    w3_r = jnp.asarray(w3, jnp.float32)                           # (1, 64), f32
    b1_r = jnp.asarray(b1, jnp.float32).reshape(1, -1)            # (1, 64)
    b2_r = jnp.asarray(b2, jnp.float32).reshape(1, -1)            # (1, 64)
    b3_r = jnp.asarray(b3, jnp.float32).reshape(-1)               # (1,) scalar
    return (w1_t, b1_r, w2_t, b2_r, w3_r, b3_r)


def mlp_forward(x, params, *, tm=None):
    """relu(relu(x @ W1.T + b1) @ W2.T + b2) @ W3.T + b3, returns (B, 1)."""
    w1_t, b1_r, w2_t, b2_r, w3_r, b3_r = params
    B, D = x.shape
    H1 = w1_t.shape[1]
    H2 = w2_t.shape[1]

    if tm is None:
        tm = _pick_tm(B)
    tm = int(tm)

    B_pad = _round_up(B, tm)
    if B_pad != B:
        x = jnp.pad(x, ((0, B_pad - B), (0, 0)))

    grid = (B_pad // tm,)
    out = pl.pallas_call(
        mlp_kernel,
        out_shape=jax.ShapeDtypeStruct((1, B_pad), jnp.float32),
        grid_spec=pltpu.PrefetchScalarGridSpec(
            num_scalar_prefetch=0,
            grid=grid,
            in_specs=[
                pl.BlockSpec((tm, D), lambda i: (i, 0)),       # x batch tile (f32)
                pl.BlockSpec((D, H1), lambda i: (0, 0)),       # W1^T (grid-invariant)
                pl.BlockSpec((1, H1), lambda i: (0, 0)),       # b1
                pl.BlockSpec((H1, H2), lambda i: (0, 0)),      # W2^T (grid-invariant)
                pl.BlockSpec((1, H2), lambda i: (0, 0)),       # b2
                pl.BlockSpec((1, H2), lambda i: (0, 0)),       # W3 (1, 64) f32
                pl.BlockSpec(memory_space=pltpu.MemorySpace.SMEM),  # b3 scalar
            ],
            out_specs=pl.BlockSpec((1, tm), lambda i: (0, i)),  # lane-dense row
        ),
        compiler_params=pltpu.CompilerParams(
            dimension_semantics=("parallel",),
        ),
    )(x, w1_t, b1_r, w2_t, b2_r, w3_r, b3_r)

    # (1, B_pad) row -> (B, 1) column, dropping any batch padding.
    return out[0, :B].reshape(B, 1)


def init_linear(key, in_features, out_features):
    # Deterministic init mimicking PyTorch nn.Linear (uniform +/- 1/sqrt(fan_in)).
    kw, kb = jax.random.split(key)
    bound = 1.0 / jnp.sqrt(jnp.float32(in_features))
    w = jax.random.uniform(kw, (out_features, in_features), jnp.float32, -bound, bound)
    b = jax.random.uniform(kb, (out_features,), jnp.float32, -bound, bound)
    return w, b


if __name__ == "__main__":
    key = jax.random.PRNGKey(0)
    k_x, k1, k2, k3 = jax.random.split(key, 4)

    batch, input_dim = 256, 32
    x = jax.random.normal(k_x, (batch, input_dim), jnp.float32)

    w1, b1 = init_linear(k1, input_dim, 64)   # nn.Linear(input_dim, 64)
    w2, b2 = init_linear(k2, 64, 64)          # nn.Linear(64, 64)
    w3, b3 = init_linear(k3, 64, 1)           # nn.Linear(64, 1)

    # Pure-JAX f32 reference (same math as the PyTorch forward).
    h = jnp.maximum(x @ w1.T + b1, 0.0)
    h = jnp.maximum(h @ w2.T + b2, 0.0)
    ref = h @ w3.T + b3

    fwd = jax.jit(mlp_forward)

    # 1) f32 matmul path: tight correctness check.
    params_f32 = prepare_params(w1, b1, w2, b2, w3, b3, compute_dtype=jnp.float32)
    out_f32 = jax.block_until_ready(fwd(x, params_f32))
    assert out_f32.shape == (batch, 1)
    assert jnp.allclose(out_f32, ref, atol=1e-4, rtol=1e-4)

    # 2) bf16 matmul path (MXU-native fast path): looser tolerance vs f32 ref.
    params_bf16 = prepare_params(w1, b1, w2, b2, w3, b3, compute_dtype=jnp.bfloat16)
    out_bf16 = jax.block_until_ready(fwd(x, params_bf16))
    assert out_bf16.shape == (batch, 1)
    assert jnp.allclose(out_bf16, ref, atol=5e-2, rtol=5e-2)

    print("KERNEL_OK")
</pallas_src>

<mosaic_0001>
module attributes {stable_mosaic.version = 11 : i64} {
  func.func @mlp_kernel(%arg0: i32, %arg1: memref<128x32xf32, #tpu.memory_space<vmem>>, %arg2: memref<32x64xf32, #tpu.memory_space<vmem>>, %arg3: memref<1x64xf32, #tpu.memory_space<vmem>>, %arg4: memref<64x64xf32, #tpu.memory_space<vmem>>, %arg5: memref<1x64xf32, #tpu.memory_space<vmem>>, %arg6: memref<1x64xf32, #tpu.memory_space<vmem>>, %arg7: memref<1xf32, #tpu.memory_space<smem>>, %arg8: memref<1x128xf32, #tpu.memory_space<vmem>>) attributes {dimension_semantics = [#tpu.dimension_semantics<parallel>], iteration_bounds = array<i64: 2>, scalar_prefetch = 0 : i64, scratch_operands = 0 : i64, tpu.core_type = #tpu.core_type<tc>, window_params = [{transform_indices = @transform_0, window_bounds = array<i64: 128, 32>}, {pipeline_mode = #tpu.pipeline_mode<synchronous>, transform_indices = @transform_1, window_bounds = array<i64: 32, 64>}, {pipeline_mode = #tpu.pipeline_mode<synchronous>, transform_indices = @transform_2, window_bounds = array<i64: 1, 64>}, {pipeline_mode = #tpu.pipeline_mode<synchronous>, transform_indices = @transform_3, window_bounds = array<i64: 64, 64>}, {pipeline_mode = #tpu.pipeline_mode<synchronous>, transform_indices = @transform_4, window_bounds = array<i64: 1, 64>}, {pipeline_mode = #tpu.pipeline_mode<synchronous>, transform_indices = @transform_5, window_bounds = array<i64: 1, 64>}, {transform_indices = @transform_6, window_bounds = array<i64: 1>}, {transform_indices = @transform_7, window_bounds = array<i64: 1, 128>}]} {
    %c0 = arith.constant 0 : index
    %c0_0 = arith.constant 0 : index
    %0 = vector.load %arg1[%c0, %c0_0] : memref<128x32xf32, #tpu.memory_space<vmem>>, vector<128x32xf32>
    %c0_1 = arith.constant 0 : index
    %c0_2 = arith.constant 0 : index
    %1 = vector.load %arg2[%c0_1, %c0_2] : memref<32x64xf32, #tpu.memory_space<vmem>>, vector<32x64xf32>
    %cst = arith.constant dense<0.000000e+00> : vector<128x64xf32>
    %2 = tpu.matmul %0, %1, %cst {dimension_numbers = #tpu.dot_dimension_numbers<[1], [0], [0], [1], [0, 0, 1, 1], [], []>} : vector<128x32xf32>, vector<32x64xf32>, vector<128x64xf32> -> vector<128x64xf32>
    %c0_3 = arith.constant 0 : index
    %c0_4 = arith.constant 0 : index
    %3 = vector.load %arg3[%c0_3, %c0_4] : memref<1x64xf32, #tpu.memory_space<vmem>>, vector<1x64xf32>
    %4 = vector.broadcast %3 : vector<1x64xf32> to vector<128x64xf32>
    %5 = arith.addf %2, %4 : vector<128x64xf32>
    %cst_5 = arith.constant 0.000000e+00 : f32
    %6 = vector.broadcast %cst_5 : f32 to vector<128x64xf32>
    %7 = arith.maximumf %5, %6 : vector<128x64xf32>
    %c0_6 = arith.constant 0 : index
    %c0_7 = arith.constant 0 : index
    %8 = vector.load %arg4[%c0_6, %c0_7] : memref<64x64xf32, #tpu.memory_space<vmem>>, vector<64x64xf32>
    %cst_8 = arith.constant dense<0.000000e+00> : vector<128x64xf32>
    %9 = tpu.matmul %7, %8, %cst_8 {dimension_numbers = #tpu.dot_dimension_numbers<[1], [0], [0], [1], [0, 0, 1, 1], [], []>} : vector<128x64xf32>, vector<64x64xf32>, vector<128x64xf32> -> vector<128x64xf32>
    %c0_9 = arith.constant 0 : index
    %c0_10 = arith.constant 0 : index
    %10 = vector.load %arg5[%c0_9, %c0_10] : memref<1x64xf32, #tpu.memory_space<vmem>>, vector<1x64xf32>
    %11 = vector.broadcast %10 : vector<1x64xf32> to vector<128x64xf32>
    %12 = arith.addf %9, %11 : vector<128x64xf32>
    %cst_11 = arith.constant 0.000000e+00 : f32
    %13 = vector.broadcast %cst_11 : f32 to vector<128x64xf32>
    %14 = arith.maximumf %12, %13 : vector<128x64xf32>
    %c0_12 = arith.constant 0 : index
    %c0_13 = arith.constant 0 : index
    %15 = vector.load %arg6[%c0_12, %c0_13] : memref<1x64xf32, #tpu.memory_space<vmem>>, vector<1x64xf32>
    %cst_14 = arith.constant dense<0.000000e+00> : vector<1x128xf32>
    %16 = tpu.matmul %15, %14, %cst_14 {dimension_numbers = #tpu.dot_dimension_numbers<[1], [1], [0], [0], [0, 0, 1, 0], [], []>} : vector<1x64xf32>, vector<128x64xf32>, vector<1x128xf32> -> vector<1x128xf32>
    %c0_15 = arith.constant 0 : index
    %17 = memref.load %arg7[%c0_15] : memref<1xf32, #tpu.memory_space<smem>>
    %18 = vector.broadcast %17 : f32 to vector<1x128xf32>
    %19 = arith.addf %16, %18 : vector<1x128xf32>
    %c0_16 = arith.constant 0 : index
    %c0_17 = arith.constant 0 : index
    %20 = vector.load %arg8[%c0_16, %c0_17] : memref<1x128xf32, #tpu.memory_space<vmem>>, vector<1x128xf32>
    tpu.vector_store %arg8[%c0_16, %c0_17], %19 {strides = array<i32>} : memref<1x128xf32, #tpu.memory_space<vmem>>, vector<1x128xf32>,
    return
  }
  func.func @transform_0(%arg0: i32) -> (i32, i32) {
    %c0_i32 = arith.constant 0 : i32
    %c0_i32_0 = arith.constant 0 : i32
    return %arg0, %c0_i32 : i32, i32
  }
  func.func @transform_1(%arg0: i32) -> (i32, i32) {
    %c0_i32 = arith.constant 0 : i32
    %c0_i32_0 = arith.constant 0 : i32
    %c0_i32_1 = arith.constant 0 : i32
    return %c0_i32, %c0_i32_0 : i32, i32
  }
  func.func @transform_2(%arg0: i32) -> (i32, i32) {
    %c0_i32 = arith.constant 0 : i32
    %c0_i32_0 = arith.constant 0 : i32
    %c0_i32_1 = arith.constant 0 : i32
    return %c0_i32, %c0_i32_0 : i32, i32
  }
  func.func @transform_3(%arg0: i32) -> (i32, i32) {
    %c0_i32 = arith.constant 0 : i32
    %c0_i32_0 = arith.constant 0 : i32
    %c0_i32_1 = arith.constant 0 : i32
    return %c0_i32, %c0_i32_0 : i32, i32
  }
  func.func @transform_4(%arg0: i32) -> (i32, i32) {
    %c0_i32 = arith.constant 0 : i32
    %c0_i32_0 = arith.constant 0 : i32
    %c0_i32_1 = arith.constant 0 : i32
    return %c0_i32, %c0_i32_0 : i32, i32
  }
  func.func @transform_5(%arg0: i32) -> (i32, i32) {
    %c0_i32 = arith.constant 0 : i32
    %c0_i32_0 = arith.constant 0 : i32
    %c0_i32_1 = arith.constant 0 : i32
    return %c0_i32, %c0_i32_0 : i32, i32
  }
  func.func @transform_6(%arg0: i32) -> i32 {
    %c0_i32 = arith.constant 0 : i32
    %c0_i32_0 = arith.constant 0 : i32
    return %c0_i32 : i32
  }
  func.func @transform_7(%arg0: i32) -> (i32, i32) {
    %c0_i32 = arith.constant 0 : i32
    %c0_i32_0 = arith.constant 0 : i32
    return %c0_i32, %arg0 : i32, i32
  }
}

</mosaic_0001>

<bundles_post_ra>
// kernel: mlp_forward.1
= control target key start
LH: loop header
LB: loop body
LE: loop exit
PB: predicated region body
PF: predicated region fallthrough
CT: control target
= control target key end

     0   :  { %s1596_s0 = inlined_call_operand.vmem [shape: f32[256,32], index: 0, kind: input, shape index: {}]   ;;  %s1597_s1 = inlined_call_operand.vmem [shape: f32[32,64], index: 1, kind: input, shape index: {}]   ;;  %s1598_s2 = inlined_call_operand.vmem [shape: f32[1,64], index: 2, kind: input, shape index: {}]   ;;  %s1599_s3 = inlined_call_operand.vmem [shape: f32[64,64], index: 3, kind: input, shape index: {}]   ;;  %s1600_s4 = inlined_call_operand.vmem [shape: f32[1,64], index: 4, kind: input, shape index: {}]   ;;  %s1601_s5 = inlined_call_operand.vmem [shape: f32[1,64], index: 5, kind: input, shape index: {}]   ;;  %s1602_s6 = inlined_call_operand.<no memory space> [shape: f32[1], index: 6, kind: input, shape index: {}]   ;;  %s1603_s7 = inlined_call_operand.hbm [shape: f32[1,256], index: 7, kind: output, shape index: {}]  }
   0x1   :  { %12 = sst [smem:[#allocation2]] %s1602_s6 }
   0x2   :  { %13 = vsyncpa [#allocation4], 0 }
   0x3   :  { %15 = vsyncpa [#allocation4 + $0x1], 0  ;;  %s1371_s26 = smov 0   ;;  %s1373_s27 = smov 0  }
   0x4   :  { %s1375_s28 = smov 0   ;;  %s1377_s29 = smov 0  }
   0x5 LB: > { %s933_s6 = sadd.s32 4294967295, %s1322_s29   ;;  %s934_s30 = sadd.s32 4294967294, %s1322_s29   ;;  %s1322_s29 = sphi %s1377_s29, %s1611_s29   ;;  %s1318_s28 = sphi %s1375_s28, %s1610_s28   ;;  %s1314_s27 = sphi %s1373_s27, %s1609_s27   ;;  %s1310_s26 = sphi %s1371_s26, %s1608_s26  }
   0x6   : > { %s1394_s8 = sadd.s32 1, %s1322_s29   ;;  %s180_s9 = sadd.s32 1, %s1318_s28 }
   0x7   : > { %s177_s10 = ssub.s32 %s1322_s29, %s1394_s8  ;;  %p190_p0 = scmp.ne.s32.totalorder %s1318_s28, %s1314_s27 }
   0x8   : > { %p178_p1 = scmp.eq.s32.totalorder %s177_s10, 0  ;;  %p191_p2 = scmp.eq.s32.totalorder %s933_s6, 1 }
   0x9   : > { %p196_p3 = scmp.ne.s32.totalorder %s1314_s27, %s1310_s26  ;;  %p197_p4 = scmp.eq.s32.totalorder %s934_s30, 1 }
   0xa   : > { %s1404_s11 = scalar_select %p178_p1, %s1318_s28, %s180_s9  }
   0xb   : > { %p1406_p5 = por %p191_p2, %p190_p0  ;;  %p1410_p6 = por %p197_p4, %p196_p3 }
   0xc   : > { %p937_p7 = scmp.ge.s32.totalorder %s1322_s29, 1  ;;  %p242_p8 = scmp.lt.s32.totalorder %s1322_s29, 3 }
   0xe   : > { %p243_p9 = pnand %p937_p7, %p242_p8 }
   0xf   : > { %v295_v0 = vld [vmem:[%s1597_s1] sm:$0xff] (!%p243_p9)  ;;  %v296_v1 = vld [vmem:[%s1597_s1 + $0x8] sm:$0xff] (!%p243_p9)  ;;  %v297_v2 = vld [vmem:[%s1597_s1 + $0x10] sm:$0xff] (!%p243_p9)  ;;  %s1425_s20 = sshll.u32 (!%p243_p9), %s933_s6, 4  ;;  %vm306_vm0 = vcmask (!%p243_p9), 261120   ;;  %vm531_vm1 = vcmask (!%p243_p9), 523264  }
  0x10   : > { %246 = sbr.rel (%p243_p9) target bundleno = 757 (0x2f5), region = 48  ;;  %v1162_v3 = vpack.c.bf16 (!%p243_p9), %v296_v1, %v295_v0  ;;  %v298_v4 = vld [vmem:[%s1597_s1 + $0x18] sm:$0xff] (!%p243_p9)  ;;  %p274_p10 = scmp.lt.s32.totalorder (!%p243_p9), %s1425_s20, 31  ;;  %v516_v6 = vld [vmem:[%s1599_s3] sm:$0xff] (!%p243_p9)  ;;  %v517_v7 = vld [vmem:[%s1599_s3 + $0x8] sm:$0xff] (!%p243_p9)  ;;  %vm1325_vm2 = vmmov (!%p243_p9), 0  }
  0x11   : > { %v1166_v5 = vpack.c.bf16 (!%p243_p9), %v298_v4, %v297_v2  ;;  %v1170_v8 = vpack.c.bf16 (!%p243_p9), %v517_v7, %v516_v6  ;;  %v518_v9 = vld [vmem:[%s1599_s3 + $0x10] sm:$0xff] (!%p243_p9)  ;;  %v519_v10 = vld [vmem:[%s1599_s3 + $0x18] sm:$0xff] (!%p243_p9)  ;;  %v520_v15 = vld [vmem:[%s1599_s3 + $0x20] sm:$0xff] (!%p243_p9)  ;;  %s742_s19 = sld [smem:[#allocation2]] (!%p243_p9)  ;;  %s271_s21 = sand.u32 (!%p243_p9), 1, %s1314_s27  }
  0x12   : > { %1163 = vmatprep.subr.bf16.mxu1 (!%p243_p9), %v1162_v3  ;;  %v1174_v14 = vpack.c.bf16 (!%p243_p9), %v519_v10, %v518_v9  ;;  %v521_v16 = vld [vmem:[%s1599_s3 + $0x28] sm:$0xff] (!%p243_p9)  ;;  %v522_v20 = vld [vmem:[%s1599_s3 + $0x30] sm:$0xff] (!%p243_p9)  ;;  %v523_v21 = vld [vmem:[%s1599_s3 + $0x38] sm:$0xff] (!%p243_p9)  ;;  %s272_s22 = scalar_lea.vmem (!%p243_p9), [#allocation3], %s271_s21  ;;  %s1554_s30 = scalar_lea.hbm (!%p243_p9), %s1603_s7, %s1425_s20 }
  0x13   : > { %1165 = vmatpush3.bf16.msra.mxu1 (!%p243_p9), %v1162_v3  ;;  %v1178_v19 = vpack.c.bf16 (!%p243_p9), %v521_v16, %v520_v15  ;;  %v1182_v24 = vpack.c.bf16 (!%p243_p9), %v523_v21, %v522_v20  ;;  %v940_v34 = vld [vmem:[%s1598_s2] ss:$0 sm:$0xff] (!%p243_p9)  ;;  %v1326_v20 = vmov (!%p243_p9), 0.0   ;;  %vm1518_vm3 = vmpackc.low (!%p243_p9), %vm531_vm1, %vm531_vm1  ;;  %s879_s23 = sshll.u32 (!%p243_p9), %s272_s22, 4  ;;  %s1327_s10 = smov (!%p243_p9), [#allocation3]   ;;  %s1556_s23 = int_to_ptr.vmem [resolvable:$true] %s879_s23 }
  0x14   : > { %1167 = vmatprep.subr.bf16.mxu1 (!%p243_p9), %v1166_v5  ;;  %1159 = vmatprep.mubr.msk.f32.mxu0 (!%p243_p9), %vm1325_vm2, %v1326_v20  ;;  %v957_v21 = vld [vmem:[%s1600_s4] ss:$0 sm:$0xff] (!%p243_p9)  ;;  %s1264_s14 = sshll.u32 (!%p243_p9), %s1327_s10, 4  ;;  %s1265_s14 = int_to_ptr.vmem [resolvable:$false] %s1264_s14 }
  0x15   : > { %p1267_p0 = scmp.lt.s32.totalorder (!%p243_p9), %s1556_s23, %s1265_s14 }
  0x17   : > { %s275_s6 = scalar_select %p274_p10, %s1425_s20, 31  ;;  %1169 = vmatpush3.bf16.msra.mxu1 %v1166_v5 }
  0x18   : > { %1171 = vmatprep.subr.bf16.mxu1 %v1170_v8 }
  0x19   : > { %s939_s9 = sshll.u32 %s275_s6, 3  ;;  %s867_s6 = scalar_lea.sflag [#allocation4], %s271_s21 }
  0x1a   : > { %s1441_s15 = scalar_lea.vmem %s1596_s0, %s939_s9  ;;  %s1260_s9 = scalar_lea.vmem %s1556_s23, 16 }
  0x1b   : > { %v279_v11 = vld [vmem:[%s1441_s15] sm:$0xff]  ;;  %v280_v12 = vld [vmem:[%s1441_s15 + $0x8] sm:$0xff]  ;;  %v281_v13 = vld [vmem:[%s1441_s15 + $0x10] sm:$0xff]  ;;  %p1261_p11 = scmp.ne.s32.totalorder %s1556_s23, %s1260_s9 }
  0x1c   : > { %1063 = vmatprep.mubr.msk.f32.mxu1 %vm306_vm0, %v279_v11  ;;  %v282_v17 = vld [vmem:[%s1441_s15 + $0x18] sm:$0xff]  ;;  %v283_v18 = vld [vmem:[%s1441_s15 + $0x20] sm:$0xff]  ;;  %v284_v22 = vld [vmem:[%s1441_s15 + $0x28] sm:$0xff] }
  0x1d   : > { %1064 = vmatmul.mubr.msk.f32.vlgmr.msra.gmra.mrb[0].mxu1 %vm306_vm0, %v280_v12  ;;  %v285_v23 = vld [vmem:[%s1441_s15 + $0x30] sm:$0xff]  ;;  %v286_v25 = vld [vmem:[%s1441_s15 + $0x38] sm:$0xff]  ;;  %v287_v26 = vld [vmem:[%s1441_s15 + $0x40] sm:$0xff]  ;;  %p1262_p12 = pnand %p1261_p11, %p1406_p5 }
  0x1e   : > { %1066 = vmatprep.mubr.msk.f32.mxu1 %vm306_vm0, %v281_v13  ;;  %1173 = vmatpush3.bf16.msra.mxu1 %v1170_v8  ;;  %v288_v27 = vld [vmem:[%s1441_s15 + $0x48] sm:$0xff]  ;;  %v289_v28 = vld [vmem:[%s1441_s15 + $0x50] sm:$0xff]  ;;  %v290_v29 = vld [vmem:[%s1441_s15 + $0x58] sm:$0xff] }
  0x1f   : > { %1175 = vmatprep.subr.bf16.mxu1 %v1174_v14  ;;  %v291_v30 = vld [vmem:[%s1441_s15 + $0x60] sm:$0xff]  ;;  %v292_v31 = vld [vmem:[%s1441_s15 + $0x68] sm:$0xff]  ;;  %v293_v32 = vld [vmem:[%s1441_s15 + $0x70] sm:$0xff]  ;;  %p1263_p13 = pneg %p1262_p12 }
  0x20   : > { %v294_v33 = vld [vmem:[%s1441_s15 + $0x78] sm:$0xff]  ;;  %s1266_s15 = scalar_lea.vmem %s1265_s14, 32 }
  0x21   : > { %1067 = vmatmul.mubr.msk.f32.gmra.mrb[2].mxu1 %vm306_vm0, %v282_v17  ;;  %p1268_p1 = scmp.lt.s32.totalorder %s1266_s15, %s1260_s9 }
  0x22   : > { %1069 = vmatprep.mubr.msk.f32.mxu1 %vm306_vm0, %v283_v18  ;;  %1177 = vmatpush3.bf16.msra.mxu1 %v1174_v14 }
  0x23   : > { %1179 = vmatprep.subr.bf16.mxu1 %v1178_v19  ;;  %p1269_p2 = por %p1268_p1, %p1267_p0 }
  0x25   : > { %1070 = vmatmul.mubr.msk.f32.gmra.mrb[4].mxu1 %vm306_vm0, %v284_v22  ;;  %p1270_p3 = pnand %p1269_p2, %p1263_p13 }
  0x26   : > { %1072 = vmatprep.mubr.msk.f32.mxu1 %vm306_vm0, %v285_v23  ;;  %1181 = vmatpush3.bf16.msra.mxu1 %v1178_v19  ;;  %v1324_v19 = vmov 0.0|0.0  }
  0x27   : > { %1183 = vmatprep.subr.bf16.mxu1 %v1182_v24  ;;  %1186 = vmatprep.subr.bf16.mxu0 %v1324_v19 }
  0x29   : > { %1073 = vmatmul.mubr.msk.f32.gmra.mrb[6].mxu1 %vm306_vm0, %v286_v25 }
  0x2a   : > { %1075 = vmatprep.mubr.msk.f32.mxu1 %vm306_vm0, %v287_v26  ;;  %1185 = vmatpush3.bf16.msra.mxu1 %v1182_v24 }
  0x2d   : > { %1076 = vmatmul.mubr.msk.f32.gmra.mrb[8].mxu1 %vm306_vm0, %v288_v27 }
  0x2e   : > { %1078 = vmatprep.mubr.msk.f32.mxu1 %vm306_vm0, %v289_v28 }
  0x31   : > { %1079 = vmatmul.mubr.msk.f32.gmra.mrb[10].mxu1 %vm306_vm0, %v290_v29 }
  0x32   : > { %1081 = vmatprep.mubr.msk.f32.mxu1 %vm306_vm0, %v291_v30 }
  0x35   : > { %1082 = vmatmul.mubr.msk.f32.gmra.mrb[12].mxu1 %vm306_vm0, %v292_v31 }
  0x36   : > { %1084 = vmatprep.mubr.msk.f32.mxu1 %vm306_vm0, %v293_v32 }
  0x39   : > { %1085 = vmatmul.mubr.msk.f32.gmra.mrb[14].mxu1 %vm306_vm0, %v294_v33 }
  0xf0   : > { %v1065_v35 = vpop.f32.mrb[0].mxu1 }
  0xf1   : > { %v427_v36 = vadd.f32 %v1065_v35, %v940_v34  ;;  %v421_v37 = vpop.f32.mrb[1].mxu1 }
  0xf2   : > { %v422_v38 = vadd.f32 %v940_v34, %v421_v37 }
  0xf3   : > { %v501_v41 = vmax.f32 %v427_v36, 0.0 }
  0xf4   : > { %v500_v39 = vmax.f32 %v422_v38, 0.0  ;;  %v1068_v40 = vpop.f32.mrb[2].mxu1 }
  0xf5   : > { %v437_v42 = vadd.f32 %v1068_v40, %v940_v34  ;;  %v431_v43 = vpop.f32.mrb[3].mxu1 }
  0xf6   : > { %v432_v44 = vadd.f32 %v940_v34, %v431_v43  ;;  %1103 = vmatprep.mubr.msk.f32.mxu1 %vm531_vm1, %v500_v39 }
  0xf7   : > { %v503_v45 = vmax.f32 %v437_v42, 0.0  ;;  %1104 = vmatmul.mubr.msk.f32.vlgmr.msra.gmra.mrb[16].mxu1 %vm531_vm1, %v501_v41 }
  0xf8   : > { %v502_v46 = vmax.f32 %v432_v44, 0.0  ;;  %v1071_v47 = vpop.f32.mrb[4].mxu1 }
  0xf9   : > { %v447_v48 = vadd.f32 %v1071_v47, %v940_v34  ;;  %v441_v49 = vpop.f32.mrb[5].mxu1 }
  0xfa   : > { %1106 = vmatprep.mubr.msk.f32.mxu1 %vm531_vm1, %v502_v46  ;;  %v442_v50 = vadd.f32 %v940_v34, %v441_v49 }
  0xfb   : > { %1107 = vmatmul.mubr.msk.f32.gmra.mrb[18].mxu1 %vm531_vm1, %v503_v45  ;;  %v505_v51 = vmax.f32 %v447_v48, 0.0 }
  0xfc   : > { %v504_v52 = vmax.f32 %v442_v50, 0.0  ;;  %v1074_v53 = vpop.f32.mrb[6].mxu1 }
  0xfd   : > { %v457_v54 = vadd.f32 %v1074_v53, %v940_v34  ;;  %v451_v55 = vpop.f32.mrb[7].mxu1 }
  0xfe   : > { %1109 = vmatprep.mubr.msk.f32.mxu1 %vm531_vm1, %v504_v52  ;;  %v452_v56 = vadd.f32 %v940_v34, %v451_v55 }
  0xff   : > { %1110 = vmatmul.mubr.msk.f32.gmra.mrb[20].mxu1 %vm531_vm1, %v505_v51  ;;  %v507_v57 = vmax.f32 %v457_v54, 0.0 }
 0x100   : > { %v506_v58 = vmax.f32 %v452_v56, 0.0  ;;  %v1077_v59 = vpop.f32.mrb[8].mxu1 }
 0x101   : > { %v467_v60 = vadd.f32 %v1077_v59, %v940_v34  ;;  %v461_v61 = vpop.f32.mrb[9].mxu1 }
 0x102   : > { %1112 = vmatprep.mubr.msk.f32.mxu1 %vm531_vm1, %v506_v58  ;;  %v462_v62 = vadd.f32 %v940_v34, %v461_v61 }
 0x103   : > { %1113 = vmatmul.mubr.msk.f32.gmra.mrb[22].mxu1 %vm531_vm1, %v507_v57  ;;  %v509_v63 = vmax.f32 %v467_v60, 0.0 }
 0x104   : > { %v508_v0 = vmax.f32 %v462_v62, 0.0  ;;  %v1080_v1 = vpop.f32.mrb[10].mxu1 }
 0x105   : > { %v477_v2 = vadd.f32 %v1080_v1, %v940_v34  ;;  %v471_v3 = vpop.f32.mrb[11].mxu1 }
 0x106   : > { %1115 = vmatprep.mubr.msk.f32.mxu1 %vm531_vm1, %v508_v0  ;;  %v472_v4 = vadd.f32 %v940_v34, %v471_v3 }
 0x107   : > { %1116 = vmatmul.mubr.msk.f32.gmra.mrb[24].mxu1 %vm531_vm1, %v509_v63  ;;  %v511_v5 = vmax.f32 %v477_v2, 0.0 }
 0x108   : > { %v510_v6 = vmax.f32 %v472_v4, 0.0  ;;  %v1083_v7 = vpop.f32.mrb[12].mxu1 }
 0x109   : > { %v487_v8 = vadd.f32 %v1083_v7, %v940_v34  ;;  %v481_v9 = vpop.f32.mrb[13].mxu1 }
 0x10a   : > { %1118 = vmatprep.mubr.msk.f32.mxu1 %vm531_vm1, %v510_v6  ;;  %v482_v10 = vadd.f32 %v940_v34, %v481_v9 }
 0x10b   : > { %1119 = vmatmul.mubr.msk.f32.gmra.mrb[26].mxu1 %vm531_vm1, %v511_v5  ;;  %v513_v11 = vmax.f32 %v487_v8, 0.0 }
 0x10c   : > { %v512_v12 = vmax.f32 %v482_v10, 0.0  ;;  %v1086_v13 = vpop.f32.mrb[14].mxu1 }
 0x10d   : > { %v497_v14 = vadd.f32 %v1086_v13, %v940_v34  ;;  %v491_v15 = vpop.f32.mrb[15].mxu1 }
 0x10e   : > { %1121 = vmatprep.mubr.msk.f32.mxu1 %vm531_vm1, %v512_v12  ;;  %v492_v16 = vadd.f32 %v940_v34, %v491_v15  ;;  %v741_v15 = vld [vmem:[%s1601_s5] sm:$0x1] }
 0x10f   : > { %1122 = vmatmul.mubr.msk.f32.gmra.mrb[28].mxu1 %vm531_vm1, %v513_v11  ;;  %v515_v17 = vmax.f32 %v497_v14, 0.0 }
 0x110   : > { %v514_v18 = vmax.f32 %v492_v16, 0.0  ;;  %v743_v16 = vstv %s742_s19 }
 0x112   : > { %1124 = vmatprep.mubr.msk.f32.mxu1 %vm531_vm1, %v514_v18 }
 0x113   : > { %1125 = vmatmul.mubr.msk.f32.gmra.mrb[30].mxu1 %vm531_vm1, %v515_v17 }
 0x1ca   : > { %v1105_v22 = vpop.f32.mrb[16].mxu1 }
 0x1cb   : > { %v652_v23 = vadd.f32 %v1105_v22, %v957_v21  ;;  %v646_v24 = vpop.f32.mrb[17].mxu1 }
 0x1cc   : > { %v647_v25 = vadd.f32 %v957_v21, %v646_v24 }
 0x1cd   : > { %v726_v26 = vmax.f32 %v652_v23, 0.0 }
 0x1ce   : > { %v725_v27 = vmax.f32 %v647_v25, 0.0  ;;  %v1108_v28 = vpop.f32.mrb[18].mxu1 }
 0x1cf   : > { %v662_v29 = vadd.f32 %v1108_v28, %v957_v21  ;;  %v656_v30 = vpop.f32.mrb[19].mxu1 }
 0x1d0   : > { %v1187_v32 = vpack.c.bf16 %v726_v26, %v725_v27  ;;  %v657_v33 = vadd.f32 %v957_v21, %v656_v30 }
 0x1d1   : > { %v728_v34 = vmax.f32 %v662_v29, 0.0 }
 0x1d2   : > { %v727_v35 = vmax.f32 %v657_v33, 0.0  ;;  %1189 = vmatpush3.bf16.xpose.msk.msra.mxu0 %vm1518_vm3, %v1187_v32  ;;  %v1111_v36 = vpop.f32.mrb[20].mxu1 }
 0x1d3   : > { %v672_v37 = vadd.f32 %v1111_v36, %v957_v21  ;;  %v666_v38 = vpop.f32.mrb[21].mxu1  ;;  %1190 = vmatprep.subr.bf16.mxu0 %v1324_v19 }
 0x1d4   : > { %v1191_v39 = vpack.c.bf16 %v728_v34, %v727_v35  ;;  %v667_v40 = vadd.f32 %v957_v21, %v666_v38 }
 0x1d5   : > { %v730_v41 = vmax.f32 %v672_v37, 0.0 }
 0x1d6   : > { %v729_v42 = vmax.f32 %v667_v40, 0.0  ;;  %v1114_v43 = vpop.f32.mrb[22].mxu1 }
 0x1d7   : > { %v682_v44 = vadd.f32 %v1114_v43, %v957_v21  ;;  %v676_v45 = vpop.f32.mrb[23].mxu1 }
 0x1d8   : > { %v1195_v46 = vpack.c.bf16 %v730_v41, %v729_v42  ;;  %v677_v47 = vadd.f32 %v957_v21, %v676_v45 }
 0x1d9   : > { %v732_v48 = vmax.f32 %v682_v44, 0.0 }
 0x1da   : > { %1193 = vmatpush3.bf16.xpose.msk.msra.mxu0 %vm1518_vm3, %v1191_v39  ;;  %v731_v49 = vmax.f32 %v677_v47, 0.0  ;;  %v1117_v50 = vpop.f32.mrb[24].mxu1 }
 0x1db   : > { %1194 = vmatprep.subr.bf16.mxu0 %v1324_v19  ;;  %v692_v51 = vadd.f32 %v1117_v50, %v957_v21  ;;  %v686_v52 = vpop.f32.mrb[25].mxu1 }
 0x1dc   : > { %v1199_v53 = vpack.c.bf16 %v732_v48, %v731_v49  ;;  %v687_v54 = vadd.f32 %v957_v21, %v686_v52 }
 0x1dd   : > { %v734_v55 = vmax.f32 %v692_v51, 0.0 }
 0x1de   : > { %v733_v56 = vmax.f32 %v687_v54, 0.0  ;;  %v1120_v57 = vpop.f32.mrb[26].mxu1 }
 0x1df   : > { %v702_v58 = vadd.f32 %v1120_v57, %v957_v21  ;;  %v696_v59 = vpop.f32.mrb[27].mxu1 }
 0x1e0   : > { %v1203_v60 = vpack.c.bf16 %v734_v55, %v733_v56  ;;  %v697_v61 = vadd.f32 %v957_v21, %v696_v59 }
 0x1e1   : > { %v736_v62 = vmax.f32 %v702_v58, 0.0 }
 0x1e2   : > { %1197 = vmatpush3.bf16.xpose.msk.msra.mxu0 %vm1518_vm3, %v1195_v46  ;;  %v735_v63 = vmax.f32 %v697_v61, 0.0  ;;  %v1123_v0 = vpop.f32.mrb[28].mxu1 }
 0x1e3   : > { %1198 = vmatprep.subr.bf16.mxu0 %v1324_v19  ;;  %v712_v1 = vadd.f32 %v1123_v0, %v957_v21  ;;  %v706_v2 = vpop.f32.mrb[29].mxu1 }
 0x1e4   : > { %v1207_v3 = vpack.c.bf16 %v736_v62, %v735_v63  ;;  %v707_v4 = vadd.f32 %v957_v21, %v706_v2 }
 0x1e5   : > { %v738_v5 = vmax.f32 %v712_v1, 0.0 }
 0x1e6   : > { %v737_v6 = vmax.f32 %v707_v4, 0.0  ;;  %v1126_v7 = vpop.f32.mrb[30].mxu1 }
 0x1e7   : > { %v722_v8 = vadd.f32 %v1126_v7, %v957_v21  ;;  %v716_v9 = vpop.f32.mrb[31].mxu1 }
 0x1e8   : > { %v1211_v10 = vpack.c.bf16 %v738_v5, %v737_v6  ;;  %v717_v11 = vadd.f32 %v957_v21, %v716_v9 }
 0x1e9   : > { %v740_v12 = vmax.f32 %v722_v8, 0.0 }
 0x1ea   : > { %1201 = vmatpush3.bf16.xpose.msk.msra.mxu0 %vm1518_vm3, %v1199_v53  ;;  %v739_v13 = vmax.f32 %v717_v11, 0.0 }
 0x1eb   : > { %1202 = vmatprep.subr.bf16.mxu0 %v1324_v19 }
 0x1ec   : > { %v1215_v14 = vpack.c.bf16 %v740_v12, %v739_v13 }
 0x1f2   : > { %1205 = vmatpush3.bf16.xpose.msk.msra.mxu0 %vm1518_vm3, %v1203_v60 }
 0x1f3   : > { %1206 = vmatprep.subr.bf16.mxu0 %v1324_v19 }
 0x1fa   : > { %1209 = vmatpush3.bf16.xpose.msk.msra.mxu0 %vm1518_vm3, %v1207_v3 }
 0x1fb   : > { %1210 = vmatprep.subr.bf16.mxu0 %v1324_v19 }
 0x202   : > { %1213 = vmatpush3.bf16.xpose.msk.msra.mxu0 %vm1518_vm3, %v1211_v10 }
 0x203   : > { %1214 = vmatprep.subr.bf16.mxu0 %v1324_v19 }
 0x20a   : > { %1217 = vmatpush3.bf16.xpose.msk.msra.mxu0 %vm1518_vm3, %v1215_v14 }
 0x211   : > { %1160 = vmatmul.mubr.msk.f32.vlgmr.msra.gmra.mrb[0].mxu0 %vm531_vm1, %v741_v15 }
 0x2e4   : > { %v861_v17 = vpop.f32.mrb[0].mxu0 }
 0x2e5   : > { %v862_v18 = vadd.f32 %v861_v17, %v743_v16  ;;  %v1161_v20 = vpop.f32.mrb[1].mxu0 }
 0x2e7   : > { %865 = vst [vmem:[%s272_s22] sm:$0x1] %v862_v18 }
 0x2e8   : > { %1273 = shalt.err (!%p1270_p3)
}
 0x2e9   : > { %s1274_s20 = scalar_lea.hbm %s1554_s30, 16  ;;  %s1278_s18 = scalar_lea.hbm %s1603_s7, 32 }
 0x2ea   : > { %p1275_p4 = scmp.ne.s32.totalorder %s1554_s30, %s1274_s20  ;;  %p1279_p9 = scmp.lt.u32.totalorder %s1554_s30, %s1603_s7 }
 0x2eb   : > { %p1280_p10 = scmp.lt.u32.totalorder %s1278_s18, %s1274_s20  ;;  %p1282_p12 = scmp.lt.u32.totalorder %s1274_s20, %s1554_s30 }
 0x2ec   : > { %p1276_p7 = pnand %p1275_p4, %p1406_p5 }
 0x2ed   : > { %p1281_p11 = por %p1280_p10, %p1279_p9 }
 0x2ee   : > { %p1277_p8 = pneg %p1276_p7 }
 0x2ef   : > { %p1283_p13 = por %p1282_p12, %p1281_p11 }
 0x2f1   : > { %p1284_p0 = pnand %p1283_p13, %p1277_p8 }
 0x2f3   : > { %1287 = shalt.err (!%p1284_p0)
}
 0x2f4   : > { %1218 = dma.vmem_to_hbm [thread:$0]  (%p1406_p5), %s1556_s23, 16, %s1554_s30, %s867_s6  }
 0x2f5 PF: > { %p1224_p1 = scmp.ge.s32.totalorder %s1322_s29, 2  ;;  %s891_s22 = sand.u32 1, %s1310_s26  }
 0x2f6   : > { %s892_s24 = scalar_lea.sflag [#allocation4], %s891_s22 }
 0x2f7   : > { %p1221_p2 = pnand %p1224_p1, %p1410_p6 }
 0x2f9   : > { %1305 = dma.done.wait (!%p1221_p2), %s892_s24, 16  }
 0x2fa   : > { %1307 = vsyncadd (!%p1221_p2), %s892_s24, 4294967280  ;;  %p18_p3 = scmp.ge.s32.totalorder %s1394_s8, 4   ;;  %s1608_s26 = smov %s1314_s27 }
 0x2fb   : > { %s1609_s27 = smov %s1318_s28  ;;  %s1610_s28 = smov %s1404_s11 }
 0x2fc   : > { %s1611_s29 = smov %s1394_s8  ;;  %20 = sbr.rel (!%p18_p3) target bundleno = 5 (0x5), region = 83 }
 0x303   :  { %896 = vsyncpa [#allocation4], 1 }
 0x304   :  { %898 = vsyncpa [#allocation4 + $0x1], 1 }

</bundles_post_ra>
